<compile_context>
chip_gen: v5e
topology: v5e:2x2
jax: 0.10.0
libtpu: 0.0.40
codegen_flags: <defaults>
</compile_context>

<pallas_src>
import functools

import jax
import jax.numpy as jnp
from jax.experimental import pallas as pl
from jax.experimental.pallas import tpu as pltpu


_SUB = 512  # lane-axis sub-tile processed per inner-loop step (bounds vreg pressure)


def _round_up(x, m):
    return (x + m - 1) // m * m


def _pinn_kernel(layer_meta, sub, xy_ref, params_ref, out_ref):
    """Fused MLP forward on one batch tile in (features, batch) layout.

    layer_meta: tuple of (row_offset, out_i, in_i) into the packed param slab.
    The batch tile (lane axis) is walked in `sub`-wide sub-tiles so activation
    live ranges stay bounded regardless of tile_n.
    """
    num_layers = len(layer_meta)
    tile_n = xy_ref.shape[1]
    num_sub = tile_n // sub

    def sub_tile(s, carry):
        base = pl.multiple_of(s * sub, sub)

        # ---- layer 0: K = d_in is tiny -> rank-d_in broadcast-FMA update on the VPU ----
        r0, out0, in0 = layer_meta[0]
        b0 = params_ref[r0:r0 + out0, in0:in0 + 1]                     # (out0, 1)
        if in0 <= 8:
            h = b0
            for c in range(in0):
                h = h + (params_ref[r0:r0 + out0, c:c + 1] *           # (out0, 1)
                         xy_ref[c:c + 1, pl.ds(base, sub)])            # (1, sub)
        else:  # generic fallback for wide inputs: use the MXU
            h = jnp.dot(params_ref[r0:r0 + out0, 0:in0],
                        xy_ref[:, pl.ds(base, sub)],
                        preferred_element_type=jnp.float32) + b0
        if num_layers > 1:
            h = jax.nn.sigmoid(h)                                      # EUP exp + recip

        # ---- hidden / output layers on the MXU (PyTorch layout: h <- W @ h + b) ----
        for i in range(1, num_layers):
            r, out_i, in_i = layer_meta[i]
            w = params_ref[r:r + out_i, 0:in_i]                        # (out_i, in_i)
            b = params_ref[r:r + out_i, in_i:in_i + 1]                 # (out_i, 1)
            h = jnp.dot(w, h, preferred_element_type=jnp.float32) + b
            if i < num_layers - 1:
                h = jax.nn.sigmoid(h)

        out_ref[:, pl.ds(base, sub)] = h.astype(out_ref.dtype)         # lane-dense store
        return carry

    jax.lax.fori_loop(0, num_sub, sub_tile, 0, unroll=True)


def _pack_params(weights, biases, lanes=128):
    """Pack PyTorch-layout (out, in) weights + biases into one (8,128)-aligned f32 slab.

    Layer i occupies rows [off_i, off_i + round_up(out_i, 8)); within each of its rows,
    cols [0, in_i) hold the weight row and col in_i holds the bias entry.
    Returns (slab, layer_meta) with layer_meta = ((off_i, out_i, in_i), ...).
    """
    metas, off = [], 0
    for w in weights:
        out_i, in_i = int(w.shape[0]), int(w.shape[1])
        if in_i + 1 > lanes:
            raise ValueError(f"layer input dim {in_i} too wide for {lanes}-lane slab")
        metas.append((off, out_i, in_i))
        off += _round_up(out_i, 8)
    slab = jnp.zeros((max(off, 8), lanes), jnp.float32)
    for (r, out_i, in_i), w, b in zip(metas, weights, biases):
        slab = slab.at[r:r + out_i, 0:in_i].set(w.astype(jnp.float32))
        slab = slab.at[r:r + out_i, in_i].set(jnp.ravel(b).astype(jnp.float32))
    return slab, tuple(metas)


def _num_batch_tiles():
    """>=2 parallel grid steps on 2-TensorCore chips (v7x); 1 big tile on single-TC chips."""
    try:
        kind = jax.devices()[0].device_kind.lower()
    except Exception:
        return 2  # safe everywhere: costs one extra ~0.35us grid step on single-TC chips
    single_tc = any(t in kind for t in ("v5e", "v5 lite", "v5lite", "v6e", "v6 lite", "v6lite"))
    return 1 if single_tc else 2


def pinn_forward(x, y, weights, biases, *, tile_n=None, max_tile_n=2048):
    """Forward pass matching PinnModel.forward(x, y).

    x, y:       (N, d) arrays (the module hstacks them; typically d = 1 -> d_in = 2).
    weights[i]: (out_i, in_i)  -- native PyTorch nn.Linear layout.
    biases[i]:  (out_i,)
    Returns (N, d_out) float32.
    """
    N, d = x.shape
    d_in = 2 * d
    d_out = int(weights[-1].shape[0])

    # Batch on the lane axis: hstack(x, y) transposed -> (d_in, N), done once here
    # (no per-tile concat / sublane shuffle inside the kernel).
    xy = jnp.concatenate([jnp.transpose(x), jnp.transpose(y)], axis=0).astype(jnp.float32)

    if tile_n is None:
        tile_n = min(_round_up(pl.cdiv(N, _num_batch_tiles()), _SUB), max_tile_n)
    sub = min(_SUB, tile_n)
    if tile_n % 128 or tile_n % sub:
        raise ValueError(f"tile_n={tile_n} must be a multiple of 128 and of {sub}")

    grid_n = pl.cdiv(N, tile_n)
    n_pad = grid_n * tile_n
    if n_pad != N:
        xy = jnp.pad(xy, ((0, 0), (0, n_pad - N)))   # padded lanes are sliced off below

    params, layer_meta = _pack_params(weights, biases)

    # Advisory cost hint (problem is launch/grid-overhead bound at small N).
    flops = 2 * N * sum(int(w.shape[0]) * int(w.shape[1]) for w in weights)
    transcendentals = N * sum(int(w.shape[0]) for w in weights[:-1])
    bytes_accessed = 4 * (d_in * N + d_out * N + int(params.size))

    kernel = functools.partial(_pinn_kernel, layer_meta, sub)

    out_t = pl.pallas_call(
        kernel,
        out_shape=jax.ShapeDtypeStruct((d_out, n_pad), jnp.float32),
        grid_spec=pltpu.PrefetchScalarGridSpec(
            num_scalar_prefetch=0,
            grid=(grid_n,),
            in_specs=[
                pl.BlockSpec((d_in, tile_n), lambda i: (0, i)),   # stacked (x; y) batch tile
                pl.BlockSpec(params.shape, lambda i: (0, 0)),     # resident packed param slab
            ],
            out_specs=pl.BlockSpec((d_out, tile_n), lambda i: (0, i)),  # lane-dense output
        ),
        compiler_params=pltpu.CompilerParams(
            dimension_semantics=("parallel",)),  # batch tiles shard across v7x's 2 TCs
        cost_estimate=pl.CostEstimate(
            flops=flops, transcendentals=transcendentals, bytes_accessed=bytes_accessed),
    )(xy, params)

    # Back to the module's (N, d_out) layout, dropping the padded tail.
    return jnp.transpose(out_t[:, :N])


def init_params(layers, key):
    """Deterministic init mimicking PyTorch nn.Linear (uniform +-1/sqrt(fan_in)).

    Weights stored in PyTorch layout (out, in); biases as (out,).
    """
    weights, biases = [], []
    for i in range(len(layers) - 1):
        fan_in, fan_out = layers[i], layers[i + 1]
        key, kw, kb = jax.random.split(key, 3)
        bound = 1.0 / float(fan_in) ** 0.5
        weights.append(jax.random.uniform(kw, (fan_out, fan_in), jnp.float32, -bound, bound))
        biases.append(jax.random.uniform(kb, (fan_out,), jnp.float32, -bound, bound))
    return weights, biases


def pinn_reference(x, y, weights, biases):
    """Pure-JAX reference matching the PyTorch module exactly."""
    h = jnp.hstack((x, y)).astype(jnp.float32)            # (N, d_in)
    for i, (w, b) in enumerate(zip(weights, biases)):
        h = h @ w.T + b                                    # nn.Linear: x @ W.T + b
        if i < len(weights) - 1:
            h = jax.nn.sigmoid(h)
    return h


if __name__ == "__main__":
    # PINN for Taylor-Green stream-velocity: inputs (x, y) coords, scalar output.
    layers = [2, 32, 32, 1]          # layers[0] = 2 because input = hstack(x, y)
    N = 1000                         # collocation points (not a multiple of the tile size)

    key = jax.random.PRNGKey(0)
    kx, ky, kp = jax.random.split(key, 3)
    x = jax.random.uniform(kx, (N, 1), jnp.float32)
    y = jax.random.uniform(ky, (N, 1), jnp.float32)
    weights, biases = init_params(layers, kp)

    out = pinn_forward(x, y, weights, biases)
    out = jax.block_until_ready(out)

    ref = pinn_reference(x, y, weights, biases)
    assert out.shape == (N, layers[-1]), out.shape
    # Hidden-layer dots run at default MXU precision (bf16 passes, f32 accumulate) on both
    # sides, while the kernel's layer-0 is exact f32 on the VPU; allow ~1e-3-level drift.
    assert jnp.allclose(out, ref, atol=1e-2, rtol=1e-2), "mismatch vs JAX reference"

    print("KERNEL_OK")
</pallas_src>

<mosaic_0001>
module attributes {stable_mosaic.version = 11 : i64} {
  func.func @_pinn_kernel(%arg0: i32, %arg1: memref<2x512xf32, #tpu.memory_space<vmem>>, %arg2: memref<72x128xf32, #tpu.memory_space<vmem>>, %arg3: memref<1x512xf32, #tpu.memory_space<vmem>>) attributes {dimension_semantics = [#tpu.dimension_semantics<parallel>], iteration_bounds = array<i64: 2>, scalar_prefetch = 0 : i64, scratch_operands = 0 : i64, tpu.core_type = #tpu.core_type<tc>, window_params = [{transform_indices = @transform_0, window_bounds = array<i64: 2, 512>}, {pipeline_mode = #tpu.pipeline_mode<synchronous>, transform_indices = @transform_1, window_bounds = array<i64: 72, 128>}, {transform_indices = @transform_2, window_bounds = array<i64: 1, 512>}]} {
    %c0_i32 = arith.constant 0 : i32
    %c512_i32 = arith.constant 512 : i32
    %0 = arith.muli %c0_i32, %c512_i32 : i32
    %1 = tpu.assume_multiple %0, 512 : i32
    %c0 = arith.constant 0 : index
    %c2 = arith.constant 2 : index
    %2 = vector.load %arg2[%c0, %c2] : memref<72x128xf32, #tpu.memory_space<vmem>>, vector<32x1xf32>
    %c0_0 = arith.constant 0 : index
    %c0_1 = arith.constant 0 : index
    %3 = vector.load %arg2[%c0_0, %c0_1] : memref<72x128xf32, #tpu.memory_space<vmem>>, vector<32x1xf32>
    %c0_2 = arith.constant 0 : index
    %4 = arith.index_cast %1 : i32 to index
    %5 = vector.load %arg1[%c0_2, %4] : memref<2x512xf32, #tpu.memory_space<vmem>>, vector<1x512xf32>
    %6 = vector.broadcast %3 : vector<32x1xf32> to vector<32x512xf32>
    %7 = vector.broadcast %5 : vector<1x512xf32> to vector<32x512xf32>
    %8 = arith.mulf %6, %7 : vector<32x512xf32>
    %9 = vector.broadcast %2 : vector<32x1xf32> to vector<32x512xf32>
    %10 = arith.addf %9, %8 : vector<32x512xf32>
    %c0_3 = arith.constant 0 : index
    %c1 = arith.constant 1 : index
    %11 = vector.load %arg2[%c0_3, %c1] : memref<72x128xf32, #tpu.memory_space<vmem>>, vector<32x1xf32>
    %c1_4 = arith.constant 1 : index
    %12 = arith.index_cast %1 : i32 to index
    %13 = vector.load %arg1[%c1_4, %12] : memref<2x512xf32, #tpu.memory_space<vmem>>, vector<1x512xf32>
    %14 = vector.broadcast %11 : vector<32x1xf32> to vector<32x512xf32>
    %15 = vector.broadcast %13 : vector<1x512xf32> to vector<32x512xf32>
    %16 = arith.mulf %14, %15 : vector<32x512xf32>
    %17 = arith.addf %10, %16 : vector<32x512xf32>
    %18 = arith.negf %17 : vector<32x512xf32>
    %19 = math.exp %18 : vector<32x512xf32>
    %cst = arith.constant 1.000000e+00 : f32
    %20 = vector.broadcast %cst : f32 to vector<32x512xf32>
    %21 = arith.addf %20, %19 : vector<32x512xf32>
    %22 = arith.divf %20, %21 : vector<32x512xf32>
    %c32 = arith.constant 32 : index
    %c0_5 = arith.constant 0 : index
    %23 = vector.load %arg2[%c32, %c0_5] : memref<72x128xf32, #tpu.memory_space<vmem>>, vector<32x32xf32>
    %c32_6 = arith.constant 32 : index
    %c32_7 = arith.constant 32 : index
    %24 = vector.load %arg2[%c32_6, %c32_7] : memref<72x128xf32, #tpu.memory_space<vmem>>, vector<32x1xf32>
    %cst_8 = arith.constant dense<0.000000e+00> : vector<32x512xf32>
    %25 = tpu.matmul %23, %22, %cst_8 {dimension_numbers = #tpu.dot_dimension_numbers<[1], [0], [0], [1], [0, 0, 1, 1], [], []>} : vector<32x32xf32>, vector<32x512xf32>, vector<32x512xf32> -> vector<32x512xf32>
    %26 = vector.broadcast %24 : vector<32x1xf32> to vector<32x512xf32>
    %27 = arith.addf %25, %26 : vector<32x512xf32>
    %28 = arith.negf %27 : vector<32x512xf32>
    %29 = math.exp %28 : vector<32x512xf32>
    %cst_9 = arith.constant 1.000000e+00 : f32
    %30 = vector.broadcast %cst_9 : f32 to vector<32x512xf32>
    %31 = arith.addf %30, %29 : vector<32x512xf32>
    %32 = arith.divf %30, %31 : vector<32x512xf32>
    %c64 = arith.constant 64 : index
    %c0_10 = arith.constant 0 : index
    %33 = vector.load %arg2[%c64, %c0_10] : memref<72x128xf32, #tpu.memory_space<vmem>>, vector<1x32xf32>
    %c64_11 = arith.constant 64 : index
    %c32_12 = arith.constant 32 : index
    %34 = vector.load %arg2[%c64_11, %c32_12] : memref<72x128xf32, #tpu.memory_space<vmem>>, vector<1x1xf32>
    %cst_13 = arith.constant dense<0.000000e+00> : vector<1x512xf32>
    %35 = tpu.matmul %33, %32, %cst_13 {dimension_numbers = #tpu.dot_dimension_numbers<[1], [0], [0], [1], [0, 0, 1, 1], [], []>} : vector<1x32xf32>, vector<32x512xf32>, vector<1x512xf32> -> vector<1x512xf32>
    %36 = vector.broadcast %34 : vector<1x1xf32> to vector<1x512xf32>
    %37 = arith.addf %35, %36 : vector<1x512xf32>
    %c0_14 = arith.constant 0 : index
    %38 = arith.index_cast %1 : i32 to index
    %39 = vector.load %arg3[%c0_14, %38] : memref<1x512xf32, #tpu.memory_space<vmem>>, vector<1x512xf32>
    tpu.vector_store %arg3[%c0_14, %38], %37 {strides = array<i32>} : memref<1x512xf32, #tpu.memory_space<vmem>>, vector<1x512xf32>,
    %c1_i32 = arith.constant 1 : i32
    return
  }
  func.func @transform_0(%arg0: i32) -> (i32, i32) {
    %c0_i32 = arith.constant 0 : i32
    %c0_i32_0 = arith.constant 0 : i32
    return %c0_i32, %arg0 : i32, i32
  }
  func.func @transform_1(%arg0: i32) -> (i32, i32) {
    %c0_i32 = arith.constant 0 : i32
    %c0_i32_0 = arith.constant 0 : i32
    %c0_i32_1 = arith.constant 0 : i32
    return %c0_i32, %c0_i32_0 : i32, i32
  }
  func.func @transform_2(%arg0: i32) -> (i32, i32) {
    %c0_i32 = arith.constant 0 : i32
    %c0_i32_0 = arith.constant 0 : i32
    return %c0_i32, %arg0 : i32, i32
  }
}

</mosaic_0001>

<bundles_post_ra>
// kernel: tpu_custom_call.1
= control target key start
LH: loop header
LB: loop body
LE: loop exit
PB: predicated region body
PF: predicated region fallthrough
CT: control target
= control target key end

     0   :  { %7 = vsyncpa [#allocation3], 0  ;;  %s2573_s0 = inlined_call_operand.hbm [shape: f32[2,1024], index: 0, kind: input, shape index: {}]   ;;  %s2574_s1 = inlined_call_operand.hbm [shape: f32[72,128], index: 1, kind: input, shape index: {}]   ;;  %s2575_s2 = inlined_call_operand.hbm [shape: f32[1,1024], index: 2, kind: output, shape index: {}]  }
   0x1   :  { %9 = vsyncpa [#allocation3 + $0x1], 0 }
   0x2   :  { %10 = vsyncpa [#allocation6], 0 }
   0x3   :  { %11 = vsyncpa [#allocation4], 0 }
   0x4   :  { %13 = vsyncpa [#allocation4 + $0x1], 0  ;;  %s1707_s9 = smov 0   ;;  %s1709_s10 = smov 0  }
   0x5   :  { %s1711_s11 = smov 0   ;;  %s1713_s12 = smov 0  }
   0x6 LB: > { %s108_s15 = sshll.u32 %s2574_s1, 4  ;;  %s1731_s16 = sadd.s32 4294967295, %s1683_s12   ;;  %s1683_s12 = sphi %s1713_s12, %s2629_s12   ;;  %s1679_s11 = sphi %s1711_s11, %s2628_s11   ;;  %s1675_s10 = sphi %s1709_s10, %s2627_s10   ;;  %s1671_s9 = sphi %s1707_s9, %s2626_s9   ;;  %s109_s15 = int_to_ptr.hbm [resolvable:$true] %s108_s15 }
   0x7   : > { %p1283_p0 = scmp.ge.s32.totalorder %s1683_s12, 1  ;;  %p40_p1 = scmp.eq.s32.totalorder %s1731_s16, 0 }
   0x8   : > { %p97_p2 = scmp.lt.s32.totalorder %s1683_s12, 3  ;;  %s1685_s18 = smov [#allocation5]  }
   0x9   : > { %s110_s19 = sshll.u32 %s1685_s18, 4  ;;  %s1686_s20 = smov 128   ;;  %s111_s19 = int_to_ptr.vmem [resolvable:$true] %s110_s19 }
   0xa   : > { %p1736_p3 = pnand %p1283_p0, %p97_p2  ;;  %s1687_s21 = smov 8  }
   0xb   : > { %s1282_s22 = sadd.s32 4294967294, %s1683_s12   ;;  %s1747_s23 = sadd.s32 1, %s1683_s12  }
   0xc   : > { %p1359_p4 = pneg %p1736_p3  ;;  %s26_s24 = sadd.s32 1, %s1679_s11 }
   0xd   : > { %s23_s25 = ssub.s32 %s1683_s12, %s1747_s23  ;;  %p33_p7 = scmp.ne.s32.totalorder %s1679_s11, %s1675_s10 }
   0xe   : > { %p1360_p6 = pnand %p1359_p4, %p40_p1  ;;  %p24_p8 = scmp.eq.s32.totalorder %s23_s25, 0 }
   0xf   : > { %p34_p9 = scmp.eq.s32.totalorder %s1683_s12, 0  ;;  %p39_p10 = scmp.ne.s32.totalorder %s1675_s10, %s1671_s9 }
  0x10   : > { %1362 = dma.hbm_to_vmem [thread:$0]  (!%p1360_p6), %s109_s15, 1152, %s111_s19, [#allocation6], %s1686_s20, %s1686_s20, %s1687_s21  }
  0x11   : > { %p84_p11 = scmp.eq.s32.totalorder %s1731_s16, 1  ;;  %p1763_p12 = por %p40_p1, %p39_p10 }
  0x12   : > { %s1759_s26 = scalar_select %p24_p8, %s1679_s11, %s26_s24  }
  0x13   : > { %p1767_p13 = por %p84_p11, %p33_p7  ;;  %p90_p0 = scmp.eq.s32.totalorder %s1282_s22, 1 }
  0x14   : > { %p35_p2 = por %p34_p9, %p33_p7  ;;  %s124_s29 = sand.u32 1, %s1679_s11  }
  0x15   : > { %p1772_p4 = por %p90_p0, %p39_p10  ;;  %p1372_p6 = scmp.lt.s32.totalorder %s1683_s12, 2 }
  0x16   : > { %s1286_s3 = sshll.u32 %s124_s29, 3  ;;  %s1350_s4 = sshll.u32 %s1683_s12, 3 }
  0x17   : > { %s133_s7 = scalar_lea.hbm %s2573_s0, %s1350_s4  ;;  %s128_s13 = scalar_lea.vmem [#allocation2], %s1286_s3 }
  0x18   : > { %s135_s8 = sshll.u32 %s133_s7, 4  ;;  %s137_s14 = sshll.u32 %s128_s13, 4  ;;  %s136_s8 = int_to_ptr.hbm [resolvable:$true] %s135_s8  ;;  %s138_s14 = int_to_ptr.vmem [resolvable:$true] %s137_s14 }
  0x19   : > { %p1781_p8 = pnand %p1372_p6, %p35_p2  ;;  %s125_s18 = scalar_lea.sflag [#allocation3], %s124_s29 }
  0x1a   : > { %s1583_s19 = sshra.s32 %s136_s8, 4  ;;  %s1590_s24 = scalar_lea.hbm %s2573_s0, 16  ;;  %s1584_s19 = int_to_ptr.hbm [resolvable:$true] %s1583_s19 }
  0x1b   : > { %s1585_s20 = scalar_lea.hbm %s1584_s19, 8  ;;  %p1587_p9 = pneg %p1781_p8 }
  0x1c   : > { %p1586_p7 = scmp.ne.s32.totalorder %s1584_s19, %s1585_s20  ;;  %p1591_p0 = scmp.lt.s32.totalorder %s1584_s19, %s2573_s0 }
  0x1d   : > { %p1592_p2 = scmp.lt.s32.totalorder %s1590_s24, %s1585_s20 }
  0x1e   : > { %p1588_p10 = pnand %p1587_p9, %p1586_p7 }
  0x1f   : > { %p1593_p6 = por %p1592_p2, %p1591_p0 }
  0x20   : > { %p1589_p11 = pneg %p1588_p10 }
  0x22   : > { %p1594_p5 = pnand %p1593_p6, %p1589_p11 }
  0x24   : > { %1597 = shalt.err (!%p1594_p5)
}
  0x25   : > { %1366 = dma.hbm_to_vmem [thread:$0]  (!%p1781_p8), %s136_s8, 128, %s138_s14, %s125_s18  }
  0x26   : > { %146 = sbr.rel (%p1736_p3) target bundleno = 601 (0x259), region = 28  ;;  %s1798_s29 = sand.u32 (!%p1736_p3), 1, %s1675_s10  }
  0x27   : > { %s1290_s4 = sshll.u32 (!%p1736_p3), %s1798_s29, 3  ;;  %s149_s5 = scalar_lea.sflag (!%p1736_p3), [#allocation3], %s1798_s29 }
  0x28   : > { %s1802_s6 = scalar_lea.vmem (!%p1736_p3), [#allocation2], %s1290_s4 }
  0x2b   : > { %1658 = dma.done.wait (%p1763_p12), %s149_s5, 128  }
  0x2c   : > { %1660 = vsyncadd (%p1763_p12), %s149_s5, 4294967168 }
  0x2d   : > { %1662 = dma.done.wait (%p40_p1), [#allocation6], 1152  }
  0x2e   : > { %1664 = vsyncadd (%p40_p1), [#allocation6], 4294966144  ;;  %v1688_v0 = vmov 2   ;;  %v1689_v1 = vmov 0   ;;  %v184_v2 = vld [vmem:[#allocation5 + $0x18] sm:$0xff]  ;;  %v182_v3 = vld [vmem:[#allocation5 + $0x8] sm:$0xff] }
  0x2f   : > { %1415 = vset.pattern.permute.xlu1 %v1688_v0  ;;  %1414 = vset.pattern.permute.xlu0 %v1689_v1  ;;  %v183_v4 = vld [vmem:[#allocation5 + $0x10] sm:$0xff]  ;;  %v1690_v5 = vmov 1   ;;  %v181_v6 = vld [vmem:[#allocation5] sm:$0xff]  ;;  %s1292_s17 = sshll.u32 %s1798_s29, 2  ;;  %s1347_s27 = sshll.u32 %s1731_s16, 2 }
  0x30   : > { %1417 = vset.pattern.permute.xlu2 %v1689_v1  ;;  %244 = vperm.xlu1 %1415, %v184_v2   ;;  %v185_v8 = vld [vmem:[%s1802_s6] ss:$2 sm:$0xf]  ;;  %v1293_v16 = vld [vmem:[%s1802_s6 + $0x1] ss:$2 sm:$0xf]  ;;  %s1197_s13 = scalar_lea.hbm %s2575_s2, %s1347_s27 }
  0x31   : > { %203 = vperm.xlu0 %1414, %v184_v2   ;;  %193 = vperm.xlu2 %1417, %v182_v3   ;;  %v207_v11 = vperm.slane %v185_v8, 0  ;;  %v208_v12 = vperm.slane %v185_v8, 1  ;;  %v209_v13 = vperm.slane %v185_v8, 2  ;;  %v210_v14 = vperm.slane %v185_v8, 3  ;;  %s178_s14 = scalar_lea.vmem [#allocation7], %s1292_s17  ;;  %s1201_s18 = sshll.u32 %s1197_s13, 4  ;;  %s1202_s18 = int_to_ptr.hbm [resolvable:$true] %s1201_s18 }
  0x32   : > { %v1814_v21 = vperm.slane %v1293_v16, 0  ;;  %v1816_v22 = vperm.slane %v1293_v16, 1  ;;  %v1818_v23 = vperm.slane %v1293_v16, 2  ;;  %v1820_v24 = vperm.slane %v1293_v16, 3  ;;  %s1199_s15 = sshll.u32 %s178_s14, 4  ;;  %s1187_s16 = scalar_lea.sflag [#allocation4], %s1798_s29  ;;  %s1200_s15 = int_to_ptr.vmem [resolvable:$true] %s1199_s15 }
  0x33   : > { %s1627_s19 = sshra.s32 %s1202_s18, 4  ;;  %s1633_s24 = scalar_lea.hbm %s2575_s2, 8  ;;  %s1628_s19 = int_to_ptr.hbm [resolvable:$true] %s1627_s19 }
  0x34   : > { %s1629_s20 = scalar_lea.hbm %s1628_s19, 4  ;;  %p1634_p12 = scmp.lt.s32.totalorder %s1628_s19, %s2575_s2 }
  0x35   : > { %p1630_p1 = scmp.ne.s32.totalorder %s1628_s19, %s1629_s20  ;;  %p1635_p8 = scmp.lt.s32.totalorder %s1633_s24, %s1629_s20 }
  0x37   : > { %p1631_p3 = pnand %p1630_p1, %p1767_p13  ;;  %p1636_p7 = por %p1635_p8, %p1634_p12 }
  0x38   : > { %1416 = vset.pattern.permute.xlu1 %v1690_v5 }
  0x39   : > { %198 = vperm.xlu0 %1414, %v183_v4   ;;  %278 = vperm.xlu1 %1416, %v184_v2   ;;  %p1632_p5 = pneg %p1631_p3 }
  0x3a   : > { %1418 = vset.pattern.permute.xlu2 %v1688_v0 }
  0x3b   : > { %240 = vperm.xlu2 %1418, %v183_v4   ;;  %p1637_p9 = pnand %p1636_p7, %p1632_p5 }
  0x41   : > { %1419 = vset.pattern.permute.xlu0 %v1690_v5  ;;  %1420 = vset.pattern.permute.xlu1 %v1689_v1 }
  0x42   : > { %274 = vperm.xlu0 %1419, %v183_v4   ;;  %188 = vperm.xlu1 %1420, %v181_v6  }
  0x43   : > { %236 = vperm.xlu2 %1418, %v182_v3  }
  0x4a   : > { %266 = vperm.xlu0 %1419, %v181_v6   ;;  %1421 = vset.pattern.permute.xlu1 %v1690_v5 }
  0x4b   : > { %232 = vperm.xlu2 %1418, %v181_v6   ;;  %270 = vperm.xlu1 %1421, %v182_v3  }
  0x8b   : > { %v194_v7 = vpop.permute.xlu2 %193 }
  0x8c   : > { %v219_v47 = vmul.f32 %v207_v11, %v194_v7  ;;  %v220_v48 = vmul.f32 %v208_v12, %v194_v7  ;;  %v221_v50 = vmul.f32 %v209_v13, %v194_v7  ;;  %v222_v51 = vmul.f32 %v210_v14, %v194_v7 }
  0x95   : > { %v241_v15 = vpop.permute.xlu2 %240 }
  0x9d   : > { %v237_v36 = vpop.permute.xlu2 %236 }
  0x9e   : > { %v251_v4 = vadd.f32 %v237_v36, %v219_v47  ;;  %v252_v8 = vadd.f32 %v237_v36, %v220_v48 }
  0xa2   : > { %v245_v9 = vpop.permute.xlu1 %244 }
  0xa3   : > { %v204_v10 = vpop.permute.xlu0 %203 }
  0xa4   : > { %v227_v17 = vmul.f32 %v207_v11, %v204_v10  ;;  %v228_v18 = vmul.f32 %v208_v12, %v204_v10  ;;  %v229_v19 = vmul.f32 %v209_v13, %v204_v10  ;;  %v230_v20 = vmul.f32 %v210_v14, %v204_v10 }
  0xa5   : > { %v254_v10 = vadd.f32 %v237_v36, %v222_v51 }
  0xa6   : > { %v259_v26 = vadd.f32 %v245_v9, %v227_v17  ;;  %v260_v27 = vadd.f32 %v245_v9, %v228_v18  ;;  %v261_v28 = vadd.f32 %v245_v9, %v229_v19  ;;  %v262_v29 = vadd.f32 %v245_v9, %v230_v20 }
  0xa7   : > { %v253_v9 = vadd.f32 %v237_v36, %v221_v50 }
  0xab   : > { %v199_v25 = vpop.permute.xlu0 %198  ;;  %v279_v30 = vpop.permute.xlu1 %278 }
  0xac   : > { %v302_v31 = vmul.f32 %v1814_v21, %v279_v30  ;;  %v303_v32 = vmul.f32 %v1816_v22, %v279_v30  ;;  %v304_v33 = vmul.f32 %v1818_v23, %v279_v30  ;;  %v305_v34 = vmul.f32 %v1820_v24, %v279_v30 }
  0xad   : > { %v223_v35 = vmul.f32 %v207_v11, %v199_v25  ;;  %v224_v41 = vmul.f32 %v208_v12, %v199_v25  ;;  %v225_v42 = vmul.f32 %v209_v13, %v199_v25  ;;  %v226_v43 = vmul.f32 %v210_v14, %v199_v25 }
  0xae   : > { %v318_v37 = vadd.f32 %v302_v31, %v259_v26  ;;  %v319_v38 = vadd.f32 %v303_v32, %v260_v27  ;;  %v320_v39 = vadd.f32 %v304_v33, %v261_v28  ;;  %v321_v40 = vadd.f32 %v305_v34, %v262_v29 }
  0xaf   : > { %v255_v52 = vadd.f32 %v241_v15, %v223_v35  ;;  %v256_v53 = vadd.f32 %v241_v15, %v224_v41  ;;  %v257_v54 = vadd.f32 %v241_v15, %v225_v42  ;;  %v258_v55 = vadd.f32 %v241_v15, %v226_v43  ;;  %v233_v15 = vpop.permute.xlu2 %232 }
  0xb0   : > { %v1306_v44 = vmul.f32 -1.442695, %v318_v37  ;;  %v1307_v45 = vmul.f32 -1.442695, %v319_v38  ;;  %v1308_v46 = vmul.f32 -1.442695, %v320_v39 }
  0xb1   : > { %v1309_v49 = vmul.f32 -1.442695, %v321_v40 }
  0xb2   : > { %1425 = vpow2.f32 %v1306_v44 }
  0xb3   : > { %1427 = vpow2.f32 %v1307_v45 }
  0xb4   : > { %v275_v56 = vpop.permute.xlu0 %274  ;;  %1429 = vpow2.f32 %v1308_v46  ;;  %v189_v60 = vpop.permute.xlu1 %188 }
  0xb5   : > { %v298_v57 = vmul.f32 %v1814_v21, %v275_v56  ;;  %v299_v58 = vmul.f32 %v1816_v22, %v275_v56  ;;  %v300_v59 = vmul.f32 %v1818_v23, %v275_v56  ;;  %1431 = vpow2.f32 %v1309_v49 }
  0xb6   : > { %v301_v61 = vmul.f32 %v1820_v24, %v275_v56  ;;  %v215_v62 = vmul.f32 %v207_v11, %v189_v60  ;;  %v216_v63 = vmul.f32 %v208_v12, %v189_v60  ;;  %v217_v3 = vmul.f32 %v209_v13, %v189_v60 }
  0xb7   : > { %v314_v0 = vadd.f32 %v298_v57, %v255_v52  ;;  %v315_v1 = vadd.f32 %v299_v58, %v256_v53  ;;  %v316_v2 = vadd.f32 %v300_v59, %v257_v54  ;;  %v218_v6 = vmul.f32 %v210_v14, %v189_v60 }
  0xb8   : > { %v317_v5 = vadd.f32 %v301_v61, %v258_v55  ;;  %v1426_v7 = vpop.eup %1425  ;;  %v247_v20 = vadd.f32 %v233_v15, %v215_v62  ;;  %v248_v11 = vadd.f32 %v233_v15, %v216_v63  ;;  %v249_v26 = vadd.f32 %v233_v15, %v217_v3 }
  0xb9   : > { %v1302_v16 = vmul.f32 -1.442695, %v314_v0  ;;  %v1428_v17 = vpop.eup %1427  ;;  %v1830_v18 = vadd.f32 1.0, %v1426_v7  ;;  %v1303_v19 = vmul.f32 -1.442695, %v315_v1  ;;  %v250_v29 = vadd.f32 %v233_v15, %v218_v6 }
  0xba   : > { %v1430_v12 = vpop.eup %1429  ;;  %v1832_v25 = vadd.f32 1.0, %v1428_v17  ;;  %v1304_v13 = vmul.f32 -1.442695, %v316_v2  ;;  %v1305_v28 = vmul.f32 -1.442695, %v317_v5 }
  0xbb   : > { %1433 = vpow2.f32 %v1302_v16  ;;  %v1432_v27 = vpop.eup %1431  ;;  %v1834_v14 = vadd.f32 1.0, %v1430_v12  ;;  %v575_v37 = vand.u32 2147483647, %v1830_v18  ;;  %vm571_vm0 = vweird.f32 %v1830_v18 }
  0xbc   : > { %1435 = vrcp.f32 %v1830_v18  ;;  %v267_v30 = vpop.permute.xlu0 %266  ;;  %v1837_v31 = vadd.f32 1.0, %v1432_v27  ;;  %v577_v63 = vand.u32 2147483648, %v1830_v18  ;;  %vm586_vm3 = vweird.f32 %v1832_v25 }
  0xbd   : > { %1437 = vrcp.f32 %v1832_v25  ;;  %v290_v32 = vmul.f32 %v1814_v21, %v267_v30  ;;  %v291_v33 = vmul.f32 %v1816_v22, %v267_v30  ;;  %v292_v34 = vmul.f32 %v1818_v23, %v267_v30  ;;  %v271_v36 = vpop.permute.xlu1 %270 }
  0xbe   : > { %1439 = vrcp.f32 %v1834_v14  ;;  %v293_v35 = vmul.f32 %v1820_v24, %v267_v30  ;;  %v294_v40 = vmul.f32 %v1814_v21, %v271_v36  ;;  %v295_v43 = vmul.f32 %v1816_v22, %v271_v36 }
  0xbf   : > { %1441 = vrcp.f32 %v1837_v31  ;;  %v306_v38 = vadd.f32 %v290_v32, %v247_v20  ;;  %v307_v39 = vadd.f32 %v291_v33, %v248_v11  ;;  %v308_v41 = vadd.f32 %v292_v34, %v249_v26 }
  0xc0   : > { %1443 = vpow2.f32 %v1303_v19  ;;  %v309_v42 = vadd.f32 %v293_v35, %v250_v29  ;;  %v296_v47 = vmul.f32 %v1818_v23, %v271_v36  ;;  %v297_v22 = vmul.f32 %v1820_v24, %v271_v36 }
  0xc1   : > { %v1434_v44 = vpop.eup %1433  ;;  %1445 = vpow2.f32 %v1304_v13  ;;  %v1294_v45 = vmul.f32 -1.442695, %v306_v38  ;;  %v1295_v46 = vmul.f32 -1.442695, %v307_v39  ;;  %v1296_v50 = vmul.f32 -1.442695, %v308_v41 }
  0xc2   : > { %v1850_v48 = vpop.eup %1435  ;;  %1447 = vpow2.f32 %v1305_v28  ;;  %v1852_v49 = vadd.f32 1.0, %v1434_v44  ;;  %v1297_v51 = vmul.f32 -1.442695, %v309_v42  ;;  %v310_v52 = vadd.f32 %v294_v40, %v251_v4 }
  0xc3   : > { %v1855_v21 = vpop.eup %1437  ;;  %1449 = vpow2.f32 %v1294_v45  ;;  %v311_v53 = vadd.f32 %v295_v43, %v252_v8  ;;  %v312_v23 = vadd.f32 %v296_v47, %v253_v9  ;;  %v567_v55 = vmul.f32 %v1850_v48, %v1830_v18 }
  0xc4   : > { %v1858_v54 = vpop.eup %1439  ;;  %1451 = vrcp.f32 %v1852_v49  ;;  %vm572_vm1 = vweird.f32 %v1850_v48  ;;  %vm1864_vm2 = vcmp.eq.f32.partialorder %v575_v37, 8.507059e+37  ;;  %v313_v24 = vadd.f32 %v297_v22, %v254_v10 }
  0xc5   : > { %v1868_v57 = vpop.eup %1441  ;;  %1453 = vpow2.f32 %v1295_v46  ;;  %v1298_v58 = vmul.f32 -1.442695, %v310_v52  ;;  %v1299_v59 = vmul.f32 -1.442695, %v311_v53  ;;  %v1300_v61 = vmul.f32 -1.442695, %v312_v23  ;;  %vm573_vm5 = vmor %vm571_vm0, %vm572_vm1 }
  0xc6   : > { %v1444_v60 = vpop.eup %1443  ;;  %1455 = vpow2.f32 %v1296_v50  ;;  %v568_v62 = vsub.f32 1.0, %v567_v55  ;;  %v1301_v2 = vmul.f32 -1.442695, %v313_v24  ;;  %v582_v3 = vmul.f32 %v1855_v21, %v1832_v25 }
  0xc7   : > { %v1446_v0 = vpop.eup %1445  ;;  %v1871_v1 = vadd.f32 1.0, %v1444_v60  ;;  %1457 = vpow2.f32 %v1297_v51  ;;  %v578_v7 = vor.u32 1.1754944e-38, %v577_v63  ;;  %vm587_vm4 = vweird.f32 %v1855_v21 }
  0xc8   : > { %v1448_v4 = vpop.eup %1447  ;;  %v1875_v5 = vadd.f32 1.0, %v1446_v0  ;;  %1459 = vpow2.f32 %v1298_v58  ;;  %v569_v6 = vmul.f32 %v1850_v48, %v568_v62  ;;  %v583_v10 = vsub.f32 1.0, %v582_v3  ;;  %vm588_vm6 = vmor %vm586_vm3, %vm587_vm4 }
  0xc9   : > { %v1450_v8 = vpop.eup %1449  ;;  %v1878_v9 = vadd.f32 1.0, %v1448_v4  ;;  %1461 = vrcp.f32 %v1871_v1  ;;  %v590_v11 = vand.u32 2147483647, %v1832_v25  ;;  %v592_v12 = vand.u32 2147483648, %v1832_v25 }
  0xca   : > { %v1882_v15 = vpop.eup %1451  ;;  %1463 = vrcp.f32 %v1875_v5  ;;  %v1885_v16 = vadd.f32 1.0, %v1450_v8  ;;  %v570_v17 = vadd.f32 %v1850_v48, %v569_v6  ;;  %v584_v20 = vmul.f32 %v1855_v21, %v583_v10 }
  0xcb   : > { %v1454_v19 = vpop.eup %1453  ;;  %1465 = vrcp.f32 %v1878_v9  ;;  %v597_v28 = vmul.f32 %v1858_v54, %v1834_v14  ;;  %vm591_vm7 = vcmp.eq.f32.partialorder %v590_v11, 8.507059e+37  ;;  %v593_v35 = vor.u32 1.1754944e-38, %v592_v12 }
  0xcc   : > { %v1456_v13 = vpop.eup %1455  ;;  %v1897_v26 = vadd.f32 1.0, %v1454_v19  ;;  %1467 = vrcp.f32 %v1885_v16  ;;  %v574_v27 = vsel %vm573_vm5, %v1850_v48, %v570_v17  ;;  %v585_v32 = vadd.f32 %v1855_v21, %v584_v20 }
  0xcd   : > { %v1458_v29 = vpop.eup %1457  ;;  %v1903_v30 = vadd.f32 1.0, %v1456_v13  ;;  %1469 = vpow2.f32 %v1299_v59  ;;  %v579_v18 = vsel %vm1864_vm2, %v578_v7, %v574_v27  ;;  %v598_v39 = vsub.f32 1.0, %v597_v28 }
  0xce   : > { %v1460_v33 = vpop.eup %1459  ;;  %v1908_v34 = vadd.f32 1.0, %v1458_v29  ;;  %1471 = vrcp.f32 %v1897_v26  ;;  %671 = vmatpush.msra.mxu0 %v579_v18  ;;  %v589_v38 = vsel %vm588_vm6, %v1855_v21, %v585_v32  ;;  %vm602_vm8 = vweird.f32 %v1858_v54 }
  0xcf   : > { %v1915_v36 = vpop.eup %1461  ;;  %1473 = vrcp.f32 %v1903_v30  ;;  %v1918_v37 = vadd.f32 1.0, %v1460_v33  ;;  %v594_v41 = vsel %vm591_vm7, %v593_v35, %v589_v38  ;;  %v599_v42 = vmul.f32 %v1858_v54, %v598_v39 }
  0xd0   : > { %v1921_v40 = vpop.eup %1463  ;;  %1475 = vrcp.f32 %v1908_v34  ;;  %700 = vmatpush.msra.mxu1 %v594_v41  ;;  %v605_v43 = vand.u32 2147483647, %v1834_v14  ;;  %v607_v44 = vand.u32 2147483648, %v1834_v14  ;;  %vm601_vm9 = vweird.f32 %v1834_v14 }
  0xd1   : > { %v1925_v25 = vpop.eup %1465  ;;  %1477 = vpow2.f32 %v1300_v61  ;;  %v612_v46 = vmul.f32 %v1868_v57, %v1837_v31  ;;  %v600_v48 = vadd.f32 %v1858_v54, %v599_v42  ;;  %vm616_vm10 = vweird.f32 %v1837_v31  ;;  %vm603_vm12 = vmor %vm601_vm9, %vm602_vm8 }
  0xd2   : > { %v1930_v45 = vpop.eup %1467  ;;  %1479 = vpow2.f32 %v1301_v2  ;;  %vm617_vm11 = vweird.f32 %v1868_v57  ;;  %v608_v14 = vor.u32 1.1754944e-38, %v607_v44  ;;  %v620_v22 = vand.u32 2147483647, %v1837_v31 }
  0xd3   : > { %v1470_v47 = vpop.eup %1469  ;;  %1481 = vrcp.f32 %v1918_v37  ;;  %v613_v21 = vsub.f32 1.0, %v612_v46  ;;  %v604_v53 = vsel %vm603_vm12, %v1858_v54, %v600_v48  ;;  %vm606_vm13 = vcmp.eq.f32.partialorder %v605_v43, 8.507059e+37  ;;  %vm618_vm1 = vmor %vm616_vm10, %vm617_vm11 }
  0xd4   : > { %v1939_v50 = vpop.eup %1471  ;;  %v1941_v51 = vadd.f32 1.0, %v1470_v47  ;;  %v622_v23 = vand.u32 2147483648, %v1837_v31  ;;  %v507_v55 = vmul.f32 %v1882_v15, %v1852_v49  ;;  %v609_v24 = vsel %vm606_vm13, %v608_v14, %v604_v53 }
  0xd5   : > { %v1946_v52 = vpop.eup %1473  ;;  %v614_v58 = vmul.f32 %v1868_v57, %v613_v21  ;;  %vm511_vm14 = vweird.f32 %v1852_v49  ;;  %vm512_vm15 = vweird.f32 %v1882_v15  ;;  %729 = vmatpush.msra.mxu2 %v609_v24  ;;  %v515_v60 = vand.u32 2147483647, %v1852_v49 }
  0xd6   : > { %v1952_v56 = vpop.eup %1475  ;;  %1483 = vrcp.f32 %v1941_v51  ;;  %v508_v54 = vsub.f32 1.0, %v507_v55  ;;  %v517_v61 = vand.u32 2147483648, %v1852_v49  ;;  %vm621_vm0 = vcmp.eq.f32.partialorder %v620_v22, 8.507059e+37  ;;  %vm513_vm4 = vmor %vm511_vm14, %vm512_vm15 }
  0xd7   : > { %v1478_v59 = vpop.eup %1477  ;;  %v615_v0 = vadd.f32 %v1868_v57, %v614_v58  ;;  %v522_v2 = vmul.f32 %v1915_v36, %v1871_v1  ;;  %v623_v6 = vor.u32 1.1754944e-38, %v622_v23  ;;  %vm526_vm2 = vweird.f32 %v1871_v1 }
  0xd8   : > { %v1480_v62 = vpop.eup %1479  ;;  %v1960_v63 = vadd.f32 1.0, %v1478_v59  ;;  %v509_v7 = vmul.f32 %v1882_v15, %v508_v54  ;;  %vm1976_vm3 = vcmp.eq.f32.partialorder %v515_v60, 8.507059e+37  ;;  %v518_v17 = vor.u32 1.1754944e-38, %v517_v61 }
  0xd9   : > { %v1965_v3 = vpop.eup %1481  ;;  %v1967_v4 = vadd.f32 1.0, %v1480_v62  ;;  %v619_v8 = vsel %vm618_vm1, %v1868_v57, %v615_v0  ;;  %v523_v19 = vsub.f32 1.0, %v522_v2  ;;  %v530_v31 = vand.u32 2147483647, %v1871_v1 }
  0xda   : > { %1485 = vrcp.f32 %v1960_v63  ;;  %v624_v20 = vsel %vm621_vm0, %v623_v6, %v619_v8  ;;  %v510_v11 = vadd.f32 %v1882_v15, %v509_v7  ;;  %vm527_vm5 = vweird.f32 %v1915_v36 }
  0xdb   : > { %758 = vmatpush.msra.mxu3 %v624_v20  ;;  %v524_v57 = vmul.f32 %v1915_v36, %v523_v19  ;;  %v532_v12 = vand.u32 2147483648, %v1871_v1  ;;  %v537_v13 = vmul.f32 %v1921_v40, %v1875_v5  ;;  %1487 = vrcp.f32 %v1967_v4  ;;  %vm528_vm8 = vmor %vm526_vm2, %vm527_vm5 }
  0xdc   : > { %v1992_v27 = vpop.eup %1483  ;;  %v514_v28 = vsel %vm513_vm4, %v1882_v15, %v510_v11  ;;  %vm541_vm6 = vweird.f32 %v1875_v5  ;;  %v545_v49 = vand.u32 2147483647, %v1875_v5  ;;  %vm531_vm7 = vcmp.eq.f32.partialorder %v530_v31, 8.507059e+37 }
  0xdd   : > { %v519_v29 = vsel %vm1976_vm3, %v518_v17, %v514_v28  ;;  %v525_v18 = vadd.f32 %v1915_v36, %v524_v57  ;;  %v538_v32 = vsub.f32 1.0, %v537_v13  ;;  %v533_v33 = vor.u32 1.1754944e-38, %v532_v12 }
  0xde   : > { %672 = vmatpush.msra.mxu0 %v519_v29  ;;  %vm542_vm9 = vweird.f32 %v1921_v40  ;;  %v547_v15 = vand.u32 2147483648, %v1875_v5  ;;  %v552_v35 = vmul.f32 %v1925_v25, %v1878_v9  ;;  %vm2009_vm10 = vcmp.eq.f32.partialorder %v545_v49, 8.507059e+37 }
  0xdf   : > { %v529_v38 = vsel %vm528_vm8, %v1915_v36, %v525_v18  ;;  %v539_v39 = vmul.f32 %v1921_v40, %v538_v32  ;;  %v560_v42 = vand.u32 2147483647, %v1878_v9  ;;  %vm556_vm11 = vweird.f32 %v1878_v9  ;;  %vm543_vm13 = vmor %vm541_vm6, %vm542_vm9 }
  0xe0   : > { %v2014_v1 = vpop.eup %1485  ;;  %v534_v43 = vsel %vm531_vm7, %v533_v33, %v529_v38  ;;  %v553_v44 = vsub.f32 1.0, %v552_v35  ;;  %v562_v46 = vand.u32 2147483648, %v1878_v9  ;;  %v548_v36 = vor.u32 1.1754944e-38, %v547_v15 }
  0xe1   : > { %701 = vmatpush.msra.mxu1 %v534_v43  ;;  %v540_v47 = vadd.f32 %v1921_v40, %v539_v39  ;;  %vm557_vm12 = vweird.f32 %v1925_v25  ;;  %v447_v48 = vmul.f32 %v1965_v3, %v1918_v37  ;;  %v2022_v14 = vpop.eup %1487  ;;  %vm2029_vm14 = vcmp.eq.f32.partialorder %v560_v42, 8.507059e+37 }
  0xe2   : > { %v554_v21 = vmul.f32 %v1925_v25, %v553_v44  ;;  %vm451_vm15 = vweird.f32 %v1918_v37  ;;  %v455_v53 = vand.u32 2147483647, %v1918_v37  ;;  %v563_v55 = vor.u32 1.1754944e-38, %v562_v46  ;;  %vm558_vm1 = vmor %vm556_vm11, %vm557_vm12 }
  0xe3   : > { %v544_v23 = vsel %vm543_vm13, %v1921_v40, %v540_v47  ;;  %v448_v24 = vsub.f32 1.0, %v447_v48  ;;  %v462_v58 = vmul.f32 %v1992_v27, %v1941_v51  ;;  %vm452_vm0 = vweird.f32 %v1965_v3 }
  0xe4   : > { %v549_v5 = vsel %vm2009_vm10, %v548_v36, %v544_v23  ;;  %v555_v59 = vadd.f32 %v1925_v25, %v554_v21  ;;  %v457_v54 = vand.u32 2147483648, %v1918_v37  ;;  %vm2048_vm2 = vcmp.eq.f32.partialorder %v455_v53, 8.507059e+37  ;;  %vm453_vm5 = vmor %vm451_vm15, %vm452_vm0 }
  0xe5   : > { %730 = vmatpush.msra.mxu2 %v549_v5  ;;  %v449_v40 = vmul.f32 %v1965_v3, %v448_v24  ;;  %v463_v61 = vsub.f32 1.0, %v462_v58  ;;  %vm466_vm3 = vweird.f32 %v1941_v51  ;;  %vm467_vm4 = vweird.f32 %v1992_v27 }
  0xe6   : > { %v559_v62 = vsel %vm558_vm1, %v1925_v25, %v555_v59  ;;  %v472_v0 = vand.u32 2147483648, %v1941_v51  ;;  %v477_v2 = vmul.f32 %v2014_v1, %v1960_v63  ;;  %v470_v8 = vand.u32 2147483647, %v1941_v51  ;;  %vm468_vm7 = vmor %vm466_vm3, %vm467_vm4 }
  0xe7   : > { %v564_v9 = vsel %vm2029_vm14, %v563_v55, %v559_v62  ;;  %v450_v6 = vadd.f32 %v1965_v3, %v449_v40  ;;  %v464_v7 = vmul.f32 %v1992_v27, %v463_v61  ;;  %v458_v25 = vor.u32 1.1754944e-38, %v457_v54  ;;  %v626_v62 = vld [vmem:[#allocation5 + $0x20] sm:$0xff] }
  0xe8   : > { %759 = vmatpush.msra.mxu3 %v564_v9  ;;  %v473_v10 = vor.u32 1.1754944e-38, %v472_v0  ;;  %v478_v17 = vsub.f32 1.0, %v477_v2  ;;  %vm481_vm6 = vweird.f32 %v1960_v63  ;;  %v485_v11 = vand.u32 2147483647, %v1960_v63 }
  0xe9   : > { %v454_v19 = vsel %vm453_vm5, %v1965_v3, %v450_v6  ;;  %v465_v20 = vadd.f32 %v1992_v27, %v464_v7  ;;  %v487_v31 = vand.u32 2147483648, %v1960_v63  ;;  %vm482_vm8 = vweird.f32 %v2014_v1 }
  0xea   : > { %v459_v57 = vsel %vm2048_vm2, %v458_v25, %v454_v19  ;;  %v479_v37 = vmul.f32 %v2014_v1, %v478_v17  ;;  %v492_v3 = vmul.f32 %v2022_v14, %v1967_v4  ;;  %vm471_vm9 = vcmp.eq.f32.partialorder %v470_v8, 8.507059e+37  ;;  %vm483_vm12 = vmor %vm481_vm6, %vm482_vm8  ;;  %v629_v8 = vld [vmem:[#allocation5 + $0x38] sm:$0xff]  ;;  %v627_v19 = vld [vmem:[#allocation5 + $0x28] sm:$0xff] }
  0xeb   : > { %673 = vmatpush.msra.mxu0 %v459_v57  ;;  %v469_v12 = vsel %vm468_vm7, %v1992_v27, %v465_v20  ;;  %vm2083_vm10 = vcmp.eq.f32.partialorder %v485_v11, 8.507059e+37  ;;  %vm496_vm11 = vweird.f32 %v1967_v4  ;;  %v500_v29 = vand.u32 2147483647, %v1967_v4  ;;  %v628_v11 = vld [vmem:[#allocation5 + $0x30] sm:$0xff] }
  0xec   : > { %v474_v28 = vsel %vm471_vm9, %v473_v10, %v469_v12  ;;  %v480_v51 = vadd.f32 %v2014_v1, %v479_v37  ;;  %v493_v49 = vsub.f32 1.0, %v492_v3  ;;  %v488_v18 = vor.u32 1.1754944e-38, %v487_v31 }
  0xed   : > { %702 = vmatpush.msra.mxu1 %v474_v28  ;;  %vm497_vm13 = vweird.f32 %v2022_v14  ;;  %v502_v27 = vand.u32 2147483648, %v1967_v4  ;;  %v387_v32 = vmul.f32 %v1930_v45, %v1885_v16  ;;  %vm391_vm14 = vweird.f32 %v1885_v16 }
  0xee   : > { %v484_v33 = vsel %vm483_vm12, %v2014_v1, %v480_v51  ;;  %v494_v15 = vmul.f32 %v2022_v14, %v493_v49  ;;  %v395_v35 = vand.u32 2147483647, %v1885_v16  ;;  %vm392_vm15 = vweird.f32 %v1930_v45  ;;  %vm498_vm1 = vmor %vm496_vm11, %vm497_vm13 }
  0xef   : > { %v489_v63 = vsel %vm2083_vm10, %v488_v18, %v484_v33  ;;  %v388_v38 = vsub.f32 1.0, %v387_v32  ;;  %v397_v39 = vand.u32 2147483648, %v1885_v16  ;;  %vm501_vm0 = vcmp.eq.f32.partialorder %v500_v29, 8.507059e+37  ;;  %vm393_vm5 = vmor %vm391_vm14, %vm392_vm15 }
  0xf0   : > { %731 = vmatpush.msra.mxu2 %v489_v63  ;;  %v495_v41 = vadd.f32 %v2022_v14, %v494_v15  ;;  %v503_v42 = vor.u32 1.1754944e-38, %v502_v27  ;;  %v402_v1 = vmul.f32 %v1939_v50, %v1897_v26  ;;  %vm2112_vm2 = vcmp.eq.f32.partialorder %v395_v35, 8.507059e+37 }
  0xf1   : > { %v389_v43 = vmul.f32 %v1930_v45, %v388_v38  ;;  %vm406_vm3 = vweird.f32 %v1897_v26  ;;  %v410_v46 = vand.u32 2147483647, %v1897_v26  ;;  %v398_v36 = vor.u32 1.1754944e-38, %v397_v39 }
  0xf2   : > { %v499_v47 = vsel %vm498_vm1, %v2022_v14, %v495_v41  ;;  %v403_v48 = vsub.f32 1.0, %v402_v1  ;;  %v417_v21 = vmul.f32 %v1946_v52, %v1903_v30  ;;  %vm407_vm4 = vweird.f32 %v1939_v50 }
  0xf3   : > { %v504_v22 = vsel %vm501_vm0, %v503_v42, %v499_v47  ;;  %v390_v4 = vadd.f32 %v1930_v45, %v389_v43  ;;  %v412_v53 = vand.u32 2147483648, %v1897_v26  ;;  %vm2129_vm6 = vcmp.eq.f32.partialorder %v410_v46, 8.507059e+37  ;;  %vm408_vm9 = vmor %vm406_vm3, %vm407_vm4 }
  0xf4   : > { %760 = vmatpush.msra.mxu3 %v504_v22  ;;  %v404_v14 = vmul.f32 %v1939_v50, %v403_v48  ;;  %v418_v55 = vsub.f32 1.0, %v417_v21  ;;  %vm421_vm7 = vweird.f32 %v1903_v30  ;;  %vm422_vm8 = vweird.f32 %v1946_v52 }
  0xf5   : > { %v394_v24 = vsel %vm393_vm5, %v1930_v45, %v390_v4  ;;  %v427_v58 = vand.u32 2147483648, %v1903_v30  ;;  %v432_v5 = vmul.f32 %v1952_v56, %v1908_v34  ;;  %v425_v40 = vand.u32 2147483647, %v1903_v30  ;;  %vm423_vm11 = vmor %vm421_vm7, %vm422_vm8 }
  0xf6   : > { %v399_v16 = vsel %vm2112_vm2, %v398_v36, %v394_v24  ;;  %v405_v59 = vadd.f32 %v1939_v50, %v404_v14  ;;  %v419_v54 = vmul.f32 %v1946_v52, %v418_v55  ;;  %v413_v45 = vor.u32 1.1754944e-38, %v412_v53 }
  0xf7   : > { %674 = vmatpush.msra.mxu0 %v399_v16  ;;  %v428_v60 = vor.u32 1.1754944e-38, %v427_v58  ;;  %v433_v61 = vsub.f32 1.0, %v432_v5  ;;  %vm437_vm10 = vweird.f32 %v1952_v56  ;;  %v440_v9 = vand.u32 2147483647, %v1908_v34 }
  0xf8   : > { %v409_v0 = vsel %vm408_vm9, %v1939_v50, %v405_v59  ;;  %v420_v2 = vadd.f32 %v1946_v52, %v419_v54  ;;  %v442_v6 = vand.u32 2147483648, %v1908_v34  ;;  %vm650_vm12 = vcmask 261120  }
  0xf9   : > { %v414_v7 = vsel %vm2129_vm6, %v413_v45, %v409_v0  ;;  %v434_v26 = vmul.f32 %v1952_v56, %v433_v61  ;;  %vm426_vm13 = vcmp.eq.f32.partialorder %v425_v40, 8.507059e+37  ;;  %1310 = vmatmul.msk.f32.vlgmr.msra.gmra.mxu0 %vm650_vm12, %v626_v62  ;;  %vm436_vm14 = vweird.f32 %v1908_v34  ;;  %v2172_v34 = vld [vmem:[#allocation5 + $0x40] sm:$0x1] }
  0xfa   : > { %703 = vmatpush.msra.mxu1 %v414_v7  ;;  %v424_v50 = vsel %vm423_vm11, %v1946_v52, %v420_v2  ;;  %v1691_v17 = vmov 32   ;;  %vm438_vm15 = vmor %vm436_vm14, %vm437_vm10  ;;  %v443_v30 = vor.u32 1.1754944e-38, %v442_v6  ;;  %vm441_vm0 = vcmp.eq.f32.partialorder %v440_v9, 8.507059e+37 }
  0xfb   : > { %v429_v25 = vsel %vm426_vm13, %v428_v60, %v424_v50  ;;  %v435_v10 = vadd.f32 %v1952_v56, %v434_v26  ;;  %1314 = vmatmul.msk.f32.vlgmr.msra.gmra.mxu1 %vm650_vm12, %v626_v62  ;;  %1422 = vset.pattern.permute.xlu1 %v1691_v17 }
  0xfc   : > { %732 = vmatpush.msra.mxu2 %v429_v25  ;;  %647 = vperm.xlu1 %1422, %v629_v8  }
  0xfd   : > { %v439_v52 = vsel %vm438_vm15, %v1952_v56, %v435_v10  ;;  %1318 = vmatmul.msk.f32.vlgmr.msra.gmra.mxu2 %vm650_vm12, %v626_v62  ;;  %1424 = vset.pattern.permute.xlu0 %v1691_v17 }
  0xfe   : > { %v444_v20 = vsel %vm441_vm0, %v443_v30, %v439_v52  ;;  %637 = vperm.xlu0 %1424, %v627_v19   ;;  %1423 = vset.pattern.permute.xlu2 %v1691_v17 }
  0xff   : > { %761 = vmatpush.msra.mxu3 %v444_v20  ;;  %642 = vperm.xlu2 %1423, %v628_v11  }
 0x100   : > { %1322 = vmatmul.msk.f32.vlgmr.msra.gmra.mxu3 %vm650_vm12, %v626_v62 }
 0x101   : > { %1311 = vmatmul.msk.f32.gmra.mxu0 %vm650_vm12, %v627_v19 }
 0x103   : > { %1315 = vmatmul.msk.f32.gmra.mxu1 %vm650_vm12, %v627_v19 }
 0x104   : > { %632 = vperm.xlu1 %1422, %v626_v62  }
 0x105   : > { %1319 = vmatmul.msk.f32.gmra.mxu2 %vm650_vm12, %v627_v19 }
 0x107   : > { %1082 = vperm.xlu2 %1423, %v2172_v34  }
 0x108   : > { %1323 = vmatmul.msk.f32.gmra.mxu3 %vm650_vm12, %v627_v19 }
 0x109   : > { %1312 = vmatmul.msk.f32.gmra.mxu0 %vm650_vm12, %v628_v11 }
 0x10b   : > { %1316 = vmatmul.msk.f32.gmra.mxu1 %vm650_vm12, %v628_v11 }
 0x10d   : > { %1320 = vmatmul.msk.f32.gmra.mxu2 %vm650_vm12, %v628_v11 }
 0x110   : > { %1324 = vmatmul.msk.f32.gmra.mxu3 %vm650_vm12, %v628_v11 }
 0x111   : > { %1313 = vmatmul.msk.f32.gmra.mxu0 %vm650_vm12, %v629_v8 }
 0x113   : > { %1317 = vmatmul.msk.f32.gmra.mxu1 %vm650_vm12, %v629_v8 }
 0x115   : > { %1321 = vmatmul.msk.f32.gmra.mxu2 %vm650_vm12, %v629_v8 }
 0x118   : > { %1325 = vmatmul.msk.f32.gmra.mxu3 %vm650_vm12, %v629_v8 }
 0x159   : > { %v643_v1 = vpop.permute.xlu2 %642 }
 0x16e   : > { %v2185_v56 = vpop.permute.xlu1 %647 }
 0x170   : > { %v638_v51 = vpop.permute.xlu0 %637 }
 0x176   : > { %v633_v31 = vpop.permute.xlu1 %632  ;;  %v676_v57 = vpop.f32.mrf.mxu0 }
 0x177   : > { %v677_v3 = vadd.f32 %v676_v57, %v633_v31 }
 0x178   : > { %v705_v37 = vpop.f32.mrf.mxu1 }
 0x179   : > { %v706_v12 = vadd.f32 %v705_v37, %v633_v31  ;;  %v1326_v13 = vmul.f32 -1.442695, %v677_v3 }
 0x17b   : > { %v1327_v28 = vmul.f32 -1.442695, %v706_v12  ;;  %1489 = vpow2.f32 %v1326_v13 }
 0x17d   : > { %1491 = vpow2.f32 %v1327_v28 }
 0x17e   : > { %v679_v49 = vpop.f32.mrf.mxu0 }
 0x17f   : > { %v680_v18 = vadd.f32 %v679_v49, %v638_v51 }
 0x180   : > { %v734_v29 = vpop.f32.mrf.mxu2  ;;  %v708_v27 = vpop.f32.mrf.mxu1 }
 0x181   : > { %v735_v32 = vadd.f32 %v734_v29, %v633_v31  ;;  %v709_v33 = vadd.f32 %v708_v27, %v638_v51  ;;  %v1330_v15 = vmul.f32 -1.442695, %v680_v18  ;;  %v1490_v35 = vpop.eup %1489 }
 0x182   : > { %v2187_v43 = vadd.f32 1.0, %v1490_v35 }
 0x183   : > { %v1328_v63 = vmul.f32 -1.442695, %v735_v32  ;;  %v763_v38 = vpop.f32.mrf.mxu3  ;;  %v1492_v39 = vpop.eup %1491  ;;  %1493 = vpow2.f32 %v1330_v15  ;;  %v1331_v42 = vmul.f32 -1.442695, %v709_v33 }
 0x184   : > { %v764_v41 = vadd.f32 %v763_v38, %v633_v31  ;;  %v2189_v46 = vadd.f32 1.0, %v1492_v39  ;;  %v850_v10 = vand.u32 2147483648, %v2187_v43  ;;  %v848_v28 = vand.u32 2147483647, %v2187_v43 }
 0x185   : > { %1495 = vpow2.f32 %v1328_v63  ;;  %vm844_vm10 = vweird.f32 %v2187_v43 }
 0x186   : > { %v1329_v44 = vmul.f32 -1.442695, %v764_v41  ;;  %v682_v47 = vpop.f32.mrf.mxu0  ;;  %v2236_v15 = vor.u32 1.1754944e-38, %v850_v10 }
 0x187   : > { %v683_v48 = vadd.f32 %v682_v47, %v643_v1 }
 0x188   : > { %1497 = vpow2.f32 %v1329_v44  ;;  %v737_v36 = vpop.f32.mrf.mxu2  ;;  %v711_v21 = vpop.f32.mrf.mxu1 }
 0x189   : > { %1499 = vpow2.f32 %v1331_v42  ;;  %v738_v22 = vadd.f32 %v737_v36, %v638_v51  ;;  %v712_v4 = vadd.f32 %v711_v21, %v643_v1  ;;  %v1494_v53 = vpop.eup %1493  ;;  %v1334_v14 = vmul.f32 -1.442695, %v683_v48 }
 0x18a   : > { %1501 = vrcp.f32 %v2187_v43  ;;  %v2193_v23 = vadd.f32 1.0, %v1494_v53 }
 0x18b   : > { %1503 = vrcp.f32 %v2189_v46  ;;  %v1332_v55 = vmul.f32 -1.442695, %v738_v22  ;;  %v766_v24 = vpop.f32.mrf.mxu3  ;;  %v1335_v58 = vmul.f32 -1.442695, %v712_v4  ;;  %v1496_v16 = vpop.eup %1495 }
 0x18c   : > { %v767_v5 = vadd.f32 %v766_v24, %v638_v51  ;;  %1505 = vpow2.f32 %v1334_v14  ;;  %v2196_v54 = vadd.f32 1.0, %v1496_v16  ;;  %v910_v37 = vand.u32 2147483648, %v2193_v23 }
 0x18d   : > { %1507 = vrcp.f32 %v2193_v23  ;;  %v908_v13 = vand.u32 2147483647, %v2193_v23  ;;  %vm904_vm1 = vweird.f32 %v2193_v23 }
 0x18e   : > { %v1498_v59 = vpop.eup %1497  ;;  %1509 = vpow2.f32 %v1332_v55  ;;  %v1333_v60 = vmul.f32 -1.442695, %v767_v5  ;;  %v685_v61 = vpop.f32.mrf.mxu0  ;;  %v2242_v38 = vor.u32 1.1754944e-38, %v910_v37 }
 0x18f   : > { %v1500_v40 = vpop.eup %1499  ;;  %v2198_v45 = vadd.f32 1.0, %v1498_v59  ;;  %1511 = vpow2.f32 %v1335_v58  ;;  %v686_v9 = vadd.f32 %v685_v61, %v2185_v56  ;;  %vm2251_vm2 = vcmp.eq.f32.partialorder %v908_v13, 8.507059e+37 }
 0x190   : > { %v2200_v62 = vpop.eup %1501  ;;  %1513 = vrcp.f32 %v2196_v54  ;;  %v2203_v0 = vadd.f32 1.0, %v1500_v40  ;;  %v740_v2 = vpop.f32.mrf.mxu2  ;;  %v863_v13 = vand.u32 2147483647, %v2189_v46 }
 0x191   : > { %v714_v6 = vpop.f32.mrf.mxu1  ;;  %v2206_v7 = vpop.eup %1503  ;;  %1515 = vrcp.f32 %v2198_v45  ;;  %v741_v26 = vadd.f32 %v740_v2, %v643_v1  ;;  %v1338_v50 = vmul.f32 -1.442695, %v686_v9  ;;  %v2218_v20 = vmul.f32 %v2200_v62, %v2187_v43 }
 0x192   : > { %v1506_v8 = vpop.eup %1505  ;;  %1517 = vrcp.f32 %v2203_v0  ;;  %v715_v25 = vadd.f32 %v714_v6, %v2185_v56  ;;  %v2246_v39 = vmul.f32 %v2206_v7, %v2189_v46  ;;  %v923_v48 = vand.u32 2147483647, %v2203_v0 }
 0x193   : > { %v2212_v17 = vpop.eup %1507  ;;  %1519 = vpow2.f32 %v1333_v60  ;;  %v2214_v30 = vadd.f32 1.0, %v1506_v8  ;;  %v1336_v52 = vmul.f32 -1.442695, %v741_v26  ;;  %v769_v19 = vpop.f32.mrf.mxu3  ;;  %vm919_vm7 = vweird.f32 %v2203_v0 }
 0x194   : > { %v1510_v11 = vpop.eup %1509  ;;  %v770_v31 = vadd.f32 %v769_v19, %v643_v1  ;;  %1521 = vpow2.f32 %v1338_v50  ;;  %v900_v57 = vmul.f32 %v2212_v17, %v2193_v23  ;;  %v1339_v18 = vmul.f32 -1.442695, %v715_v25 }
 0x195   : > { %v1512_v3 = vpop.eup %1511  ;;  %v2223_v12 = vadd.f32 1.0, %v1510_v11  ;;  %1523 = vrcp.f32 %v2214_v30  ;;  %v970_v32 = vand.u32 2147483648, %v2214_v30  ;;  %v968_v1 = vand.u32 2147483647, %v2214_v30 }
 0x196   : > { %v2228_v51 = vpop.eup %1513  ;;  %v2230_v49 = vadd.f32 1.0, %v1512_v3  ;;  %1525 = vpow2.f32 %v1336_v52  ;;  %v1337_v29 = vmul.f32 -1.442695, %v770_v31  ;;  %v901_v33 = vsub.f32 1.0, %v900_v57 }
 0x197   : > { %v2232_v27 = vpop.eup %1515  ;;  %1527 = vrcp.f32 %v2223_v12  ;;  %vm964_vm3 = vweird.f32 %v2214_v30  ;;  %vm905_vm4 = vweird.f32 %v2212_v17  ;;  %v2264_v55 = vor.u32 1.1754944e-38, %v970_v32 }
 0x198   : > { %v2238_v35 = vpop.eup %1517  ;;  %1529 = vrcp.f32 %v2230_v49  ;;  %v743_v63 = vpop.f32.mrf.mxu2  ;;  %v902_v44 = vmul.f32 %v2212_v17, %v901_v33  ;;  %vm979_vm5 = vweird.f32 %v2230_v49  ;;  %v983_v16 = vand.u32 2147483647, %v2230_v49  ;;  %vm2289_vm8 = vmor %vm904_vm1, %vm905_vm4 }
 0x199   : > { %v1520_v41 = vpop.eup %1519  ;;  %1531 = vpow2.f32 %v1337_v29  ;;  %v744_v42 = vadd.f32 %v743_v63, %v2185_v56  ;;  %vm2276_vm6 = vcmp.eq.f32.partialorder %v968_v1, 8.507059e+37  ;;  %v985_v61 = vand.u32 2147483648, %v2230_v49 }
 0x19a   : > { %v1522_v36 = vpop.eup %1521  ;;  %1533 = vpow2.f32 %v1339_v18  ;;  %v2260_v22 = vadd.f32 1.0, %v1520_v41  ;;  %v915_v8 = vmul.f32 %v2238_v35, %v2203_v0  ;;  %vm845_vm11 = vweird.f32 %v2200_v62 }
 0x19b   : > { %v2258_v21 = vpop.eup %1523  ;;  %v2262_v4 = vadd.f32 1.0, %v1522_v36  ;;  %v1340_v53 = vmul.f32 -1.442695, %v744_v42  ;;  %v772_v14 = vpop.f32.mrf.mxu3  ;;  %v2322_v29 = vor.u32 1.1754944e-38, %v985_v61  ;;  %vm2327_vm0 = vcmp.eq.f32.partialorder %v983_v16, 8.507059e+37 }
 0x19c   : > { %v1526_v24 = vpop.eup %1525  ;;  %v773_v58 = vadd.f32 %v772_v14, %v2185_v56  ;;  %v960_v5 = vmul.f32 %v2258_v21, %v2214_v30  ;;  %v903_v56 = vadd.f32 %v2212_v17, %v902_v44  ;;  %vm965_vm9 = vweird.f32 %v2258_v21 }
 0x19d   : > { %v2271_v59 = vpop.eup %1527  ;;  %v2273_v40 = vadd.f32 1.0, %v1526_v24  ;;  %1535 = vrcp.f32 %v2262_v4  ;;  %v1030_v25 = vand.u32 2147483648, %v2262_v4  ;;  %v1028_v19 = vand.u32 2147483647, %v2262_v4  ;;  %vm2318_vm13 = vmor %vm964_vm3, %vm965_vm9 }
 0x19e   : > { %v2283_v2 = vpop.eup %1529  ;;  %1537 = vpow2.f32 %v1340_v53  ;;  %v1341_v9 = vmul.f32 -1.442695, %v773_v58  ;;  %v961_v6 = vsub.f32 1.0, %v960_v5  ;;  %v907_v37 = vsel %vm2289_vm8, %v2212_v17, %v903_v56 }
 0x19f   : > { %v1532_v50 = vpop.eup %1531  ;;  %1539 = vrcp.f32 %v2260_v22  ;;  %v975_v10 = vmul.f32 %v2283_v2, %v2230_v49  ;;  %v916_v18 = vsub.f32 1.0, %v915_v8  ;;  %vm1024_vm14 = vweird.f32 %v2262_v4 }
 0x1a0   : > { %v1534_v23 = vpop.eup %1533  ;;  %v2302_v52 = vadd.f32 1.0, %v1532_v50  ;;  %1541 = vpow2.f32 %v1341_v9  ;;  %v962_v11 = vmul.f32 %v2258_v21, %v961_v6  ;;  %v1031_v17 = vor.u32 1.1754944e-38, %v1030_v25 }
 0x1a1   : > { %1543 = vrcp.f32 %v2273_v40  ;;  %v2307_v31 = vadd.f32 1.0, %v1534_v23  ;;  %v976_v57 = vsub.f32 1.0, %v975_v10  ;;  %vm980_vm15 = vweird.f32 %v2283_v2 }
 0x1a2   : > { %1545 = vrcp.f32 %v2302_v52  ;;  %v963_v3 = vadd.f32 %v2258_v21, %v962_v11  ;;  %vm2332_vm1 = vcmp.eq.f32.partialorder %v1028_v19, 8.507059e+37  ;;  %v2341_v44 = vsel %vm2251_vm2, %v2242_v38, %v907_v37  ;;  %vm2368_vm8 = vmor %vm979_vm5, %vm980_vm15 }
 0x1a3   : > { %v1536_v32 = vpop.eup %1535  ;;  %1547 = vrcp.f32 %v2307_v31  ;;  %v1045_v42 = vand.u32 2147483648, %v2307_v31  ;;  %v977_v1 = vmul.f32 %v2283_v2, %v976_v57  ;;  %vm2343_vm3 = vcmp.eq.f32.partialorder %v923_v48, 8.507059e+37 }
 0x1a4   : > { %v1538_v30 = vpop.eup %1537  ;;  %v1020_v63 = vmul.f32 %v1536_v32, %v2262_v4  ;;  %v1043_v24 = vand.u32 2147483647, %v2307_v31  ;;  %v967_v58 = vsel %vm2318_vm13, %v2258_v21, %v963_v3  ;;  %vm920_vm4 = vweird.f32 %v2238_v35 }
 0x1a5   : > { %v2347_v53 = vpop.eup %1539  ;;  %v2349_v14 = vadd.f32 1.0, %v1538_v30  ;;  %v978_v38 = vadd.f32 %v2283_v2, %v977_v1  ;;  %v917_v48 = vmul.f32 %v2238_v35, %v916_v18  ;;  %v925_v16 = vand.u32 2147483648, %v2203_v0  ;;  %vm2384_vm5 = vmor %vm919_vm7, %vm920_vm4 }
 0x1a6   : > { %v1542_v5 = vpop.eup %1541  ;;  %v1021_v47 = vsub.f32 1.0, %v1020_v63  ;;  %vm1025_vm2 = vweird.f32 %v1536_v32  ;;  %v841_v9 = vsub.f32 1.0, %v2218_v20  ;;  %vm1039_vm9 = vweird.f32 %v2307_v31  ;;  %vm2409_vm7 = vmor %vm844_vm10, %vm845_vm11 }
 0x1a7   : > { %v2359_v61 = vpop.eup %1543  ;;  %1549 = vrcp.f32 %v2349_v14  ;;  %v2362_v56 = vadd.f32 1.0, %v1542_v5  ;;  %v1046_v8 = vor.u32 1.1754944e-38, %v1045_v42  ;;  %v972_v50 = vsel %vm2276_vm6, %v2264_v55, %v967_v58  ;;  %vm1026_vm15 = vmor %vm1024_vm14, %vm1025_vm2 }
 0x1a8   : > { %v2373_v6 = vpop.eup %1545  ;;  %v1022_v26 = vmul.f32 %v1536_v32, %v1021_v47  ;;  %v918_v25 = vadd.f32 %v2238_v35, %v917_v48  ;;  %v842_v10 = vmul.f32 %v2200_v62, %v841_v9  ;;  %vm2392_vm13 = vcmp.eq.f32.partialorder %v848_v28, 8.507059e+37 }
 0x1a9   : > { %v1548_v20 = vpop.eup %1547  ;;  %1551 = vrcp.f32 %v2362_v56  ;;  %v856_v55 = vsub.f32 1.0, %v2246_v39  ;;  %vm2398_vm6 = vcmp.eq.f32.partialorder %v1043_v24, 8.507059e+37  ;;  %v982_v11 = vsel %vm2368_vm8, %v2283_v2, %v978_v38 }
 0x1aa   : > { %v1023_v23 = vadd.f32 %v1536_v32, %v1022_v26  ;;  %v1035_v0 = vmul.f32 %v1548_v20, %v2307_v31  ;;  %v926_v57 = vor.u32 1.1754944e-38, %v925_v16  ;;  %v922_v39 = vsel %vm2384_vm5, %v2238_v35, %v918_v25 }
 0x1ab   : > { %v843_v37 = vadd.f32 %v2200_v62, %v842_v10  ;;  %v857_v2 = vmul.f32 %v2206_v7, %v856_v55  ;;  %vm859_vm4 = vweird.f32 %v2189_v46  ;;  %vm860_vm10 = vweird.f32 %v2206_v7 }
 0x1ac   : > { %v1027_v3 = vsel %vm1026_vm15, %v1536_v32, %v1023_v23  ;;  %v1036_v43 = vsub.f32 1.0, %v1035_v0  ;;  %vm2430_vm11 = vmor %vm859_vm4, %vm860_vm10  ;;  %v865_v32 = vand.u32 2147483648, %v2189_v46  ;;  %vm1040_vm14 = vweird.f32 %v1548_v20 }
 0x1ad   : > { %v1550_v18 = vpop.eup %1549  ;;  %v1032_v4 = vsel %vm2332_vm1, %v1031_v17, %v1027_v3  ;;  %v847_v35 = vsel %vm2409_vm7, %v2200_v62, %v843_v37  ;;  %v858_v30 = vadd.f32 %v2206_v7, %v857_v2  ;;  %v987_v41 = vsel %vm2327_vm0, %v2322_v29, %v982_v11  ;;  %vm1041_vm0 = vmor %vm1039_vm9, %vm1040_vm14 }
 0x1ae   : > { %1099 = vmatpush.msrb.mxu0 %v1032_v4  ;;  %v1037_v42 = vmul.f32 %v1548_v20, %v1036_v43  ;;  %v1050_v17 = vmul.f32 %v1550_v18, %v2349_v14  ;;  %v927_v62 = vsel %vm2343_vm3, %v926_v57, %v922_v39  ;;  %vm864_vm1 = vcmp.eq.f32.partialorder %v863_v13, 8.507059e+37 }
 0x1af   : > { %v1552_v1 = vpop.eup %1551  ;;  %v862_v24 = vsel %vm2430_vm11, %v2206_v7, %v858_v30  ;;  %v866_v58 = vor.u32 1.1754944e-38, %v865_v32  ;;  %v852_v5 = vsel %vm2392_vm13, %v2236_v15, %v847_v35  ;;  %v1058_v29 = vand.u32 2147483647, %v2349_v14 }
 0x1b0   : > { %v1038_v46 = vadd.f32 %v1548_v20, %v1037_v42  ;;  %1100 = vmatpush.msrb.mxu0 %v972_v50  ;;  %v1051_v33 = vsub.f32 1.0, %v1050_v17  ;;  %vm1054_vm3 = vweird.f32 %v2349_v14  ;;  %vm1055_vm2 = vweird.f32 %v1550_v18 }
 0x1b1   : > { %v1060_v36 = vand.u32 2147483648, %v2349_v14  ;;  %v1065_v7 = vmul.f32 %v1552_v1, %v2362_v56  ;;  %v867_v38 = vsel %vm864_vm1, %v866_v58, %v862_v24  ;;  %vm1069_vm8 = vweird.f32 %v2362_v56  ;;  %vm1056_vm13 = vmor %vm1054_vm3, %vm1055_vm2 }
 0x1b2   : > { %v1042_v47 = vsel %vm1041_vm0, %v1548_v20, %v1038_v46  ;;  %1101 = vmatpush.msrb.mxu0 %v2341_v44  ;;  %v1052_v48 = vmul.f32 %v1550_v18, %v1051_v33  ;;  %vm1070_vm5 = vweird.f32 %v1552_v1  ;;  %v1073_v31 = vand.u32 2147483647, %v2362_v56 }
 0x1b3   : > { %v1047_v15 = vsel %vm2398_vm6, %v1046_v8, %v1042_v47  ;;  %v1066_v16 = vsub.f32 1.0, %v1065_v7  ;;  %vm1059_vm9 = vcmp.eq.f32.partialorder %v1058_v29, 8.507059e+37  ;;  %v1075_v9 = vand.u32 2147483648, %v2362_v56  ;;  %vm1071_vm4 = vmor %vm1069_vm8, %vm1070_vm5 }
 0x1b4   : > { %1119 = vmatpush.msrb.mxu1 %v1047_v15  ;;  %1102 = vmatpush.msrb.mxu0 %v852_v5  ;;  %v1053_v21 = vadd.f32 %v1550_v18, %v1052_v48  ;;  %v990_v44 = vmul.f32 %v2359_v61, %v2273_v40  ;;  %v1061_v26 = vor.u32 1.1754944e-38, %v1060_v36  ;;  %vm994_vm6 = vweird.f32 %v2273_v40 }
 0x1b5   : > { %v1067_v50 = vmul.f32 %v1552_v1, %v1066_v16  ;;  %1342 = vmatmul.msk.f32.vlgmr.msrb.gmra.mxu0 %vm650_vm12, %v2172_v34  ;;  %v998_v8 = vand.u32 2147483647, %v2273_v40  ;;  %vm995_vm7 = vweird.f32 %v2359_v61  ;;  %v1005_v20 = vmul.f32 %v2373_v6, %v2302_v52 }
 0x1b6   : > { %1120 = vmatpush.msrb.mxu1 %v987_v41  ;;  %v1057_v25 = vsel %vm1056_vm13, %v1550_v18, %v1053_v21  ;;  %v991_v49 = vsub.f32 1.0, %v990_v44  ;;  %vm1074_vm15 = vcmp.eq.f32.partialorder %v1073_v31, 8.507059e+37  ;;  %v1000_v60 = vand.u32 2147483648, %v2273_v40  ;;  %vm996_vm14 = vmor %vm994_vm6, %vm995_vm7 }
 0x1b7   : > { %v1062_v10 = vsel %vm1059_vm9, %v1061_v26, %v1057_v25  ;;  %v1068_v14 = vadd.f32 %v1552_v1, %v1067_v50  ;;  %v1076_v55 = vor.u32 1.1754944e-38, %v1075_v9  ;;  %vm2476_vm10 = vcmp.eq.f32.partialorder %v998_v8, 8.507059e+37  ;;  %v1083_v8 = vpop.permute.xlu2 %1082 }
 0x1b8   : > { %1121 = vmatpush.msrb.mxu1 %v927_v62  ;;  %1139 = vmatpush.msrb.mxu2 %v1062_v10  ;;  %v992_v23 = vmul.f32 %v2359_v61, %v991_v49  ;;  %v1006_v19 = vsub.f32 1.0, %v1005_v20  ;;  %vm1010_vm11 = vweird.f32 %v2373_v6  ;;  %v1015_v57 = vand.u32 2147483648, %v2302_v52 }
 0x1b9   : > { %v1072_v11 = vsel %vm1071_vm4, %v1552_v1, %v1068_v14  ;;  %v930_v28 = vmul.f32 %v2271_v59, %v2223_v12  ;;  %v1013_v2 = vand.u32 2147483647, %v2302_v52  ;;  %v1001_v3 = vor.u32 1.1754944e-38, %v1000_v60 }
 0x1ba   : > { %1122 = vmatpush.msrb.mxu1 %v867_v38  ;;  %v1077_v39 = vsel %vm1074_vm15, %v1076_v55, %v1072_v11  ;;  %v993_v56 = vadd.f32 %v2359_v61, %v992_v23  ;;  %v1007_v37 = vmul.f32 %v2373_v6, %v1006_v19  ;;  %vm1009_vm1 = vweird.f32 %v2302_v52 }
 0x1bb   : > { %1159 = vmatpush.msrb.mxu3 %v1077_v39  ;;  %1343 = vmatmul.msk.f32.vlgmr.msrb.gmra.mxu1 %vm650_vm12, %v2172_v34  ;;  %v1016_v43 = vor.u32 1.1754944e-38, %v1015_v57  ;;  %v931_v13 = vsub.f32 1.0, %v930_v28  ;;  %v938_v35 = vand.u32 2147483647, %v2223_v12  ;;  %v940_v30 = vand.u32 2147483648, %v2223_v12  ;;  %vm1011_vm0 = vmor %vm1009_vm1, %vm1010_vm11 }
 0x1bc   : > { %v997_v18 = vsel %vm996_vm14, %v2359_v61, %v993_v56  ;;  %v1008_v4 = vadd.f32 %v2373_v6, %v1007_v37  ;;  %vm935_vm3 = vweird.f32 %v2271_v59  ;;  %v945_v52 = vmul.f32 %v2347_v53, %v2260_v22 }
 0x1bd   : > { %v1002_v63 = vsel %vm2476_vm10, %v1001_v3, %v997_v18  ;;  %v932_v40 = vmul.f32 %v2271_v59, %v931_v13  ;;  %vm1014_vm2 = vcmp.eq.f32.partialorder %v1013_v2, 8.507059e+37  ;;  %vm934_vm8 = vweird.f32 %v2223_v12 }
 0x1be   : > { %1140 = vmatpush.msrb.mxu2 %v1002_v63  ;;  %v1012_v61 = vsel %vm1011_vm0, %v2373_v6, %v1008_v4  ;;  %v946_v41 = vsub.f32 1.0, %v945_v52  ;;  %vm936_vm5 = vmor %vm934_vm8, %vm935_vm3  ;;  %vm939_vm9 = vcmp.eq.f32.partialorder %v938_v35, 8.507059e+37  ;;  %v941_v17 = vor.u32 1.1754944e-38, %v940_v30 }
 0x1bf   : > { %v1017_v32 = vsel %vm1014_vm2, %v1016_v43, %v1012_v61  ;;  %v933_v42 = vadd.f32 %v2271_v59, %v932_v40  ;;  %v955_v1 = vand.u32 2147483648, %v2260_v22  ;;  %v870_v62 = vmul.f32 %v2228_v51, %v2196_v54 }
 0x1c0   : > { %1160 = vmatpush.msrb.mxu3 %v1017_v32  ;;  %v947_v6 = vmul.f32 %v2347_v53, %v946_v41  ;;  %vm950_vm13 = vweird.f32 %v2347_v53  ;;  %v953_v58 = vand.u32 2147483647, %v2260_v22  ;;  %vm949_vm6 = vweird.f32 %v2260_v22 }
 0x1c1   : > { %v937_v24 = vsel %vm936_vm5, %v2271_v59, %v933_v42  ;;  %v871_v12 = vsub.f32 1.0, %v870_v62  ;;  %v880_v33 = vand.u32 2147483648, %v2196_v54  ;;  %v885_v29 = vmul.f32 %v2232_v27, %v2198_v45  ;;  %vm951_vm7 = vmor %vm949_vm6, %vm950_vm13 }
 0x1c2   : > { %v942_v46 = vsel %vm939_vm9, %v941_v17, %v937_v24  ;;  %v948_v5 = vadd.f32 %v2347_v53, %v947_v6  ;;  %v956_v59 = vor.u32 1.1754944e-38, %v955_v1  ;;  %vm875_vm15 = vweird.f32 %v2228_v51 }
 0x1c3   : > { %1141 = vmatpush.msrb.mxu2 %v942_v46  ;;  %v872_v36 = vmul.f32 %v2228_v51, %v871_v12  ;;  %v878_v7 = vand.u32 2147483647, %v2196_v54  ;;  %vm954_vm4 = vcmp.eq.f32.partialorder %v953_v58, 8.507059e+37  ;;  %v886_v38 = vsub.f32 1.0, %v885_v29 }
 0x1c4   : > { %v952_v47 = vsel %vm951_vm7, %v2347_v53, %v948_v5  ;;  %vm874_vm10 = vweird.f32 %v2196_v54  ;;  %v895_v15 = vand.u32 2147483648, %v2198_v45  ;;  %v881_v16 = vor.u32 1.1754944e-38, %v880_v33 }
 0x1c5   : > { %v957_v48 = vsel %vm954_vm4, %v956_v59, %v952_v47  ;;  %v873_v22 = vadd.f32 %v2228_v51, %v872_v36  ;;  %vm876_vm11 = vmor %vm874_vm10, %vm875_vm15  ;;  %v887_v31 = vmul.f32 %v2232_v27, %v886_v38  ;;  %vm890_vm14 = vweird.f32 %v2232_v27 }
 0x1c6   : > { %1161 = vmatpush.msrb.mxu3 %v957_v48  ;;  %v893_v21 = vand.u32 2147483647, %v2198_v45  ;;  %vm879_vm1 = vcmp.eq.f32.partialorder %v878_v7, 8.507059e+37  ;;  %vm889_vm0 = vweird.f32 %v2198_v45  ;;  %v896_v54 = vor.u32 1.1754944e-38, %v895_v15 }
 0x1c7   : > { %v877_v53 = vsel %vm876_vm11, %v2228_v51, %v873_v22  ;;  %v888_v44 = vadd.f32 %v2232_v27, %v887_v31  ;;  %vm891_vm3 = vmor %vm889_vm0, %vm890_vm14  ;;  %v1181_v10 = vlaneseq  ;;  %vm1174_vm8 = vcmask 1040384  }
 0x1c8   : > { %v882_v9 = vsel %vm879_vm1, %v881_v16, %v877_v53  ;;  %vm894_vm2 = vcmp.eq.f32.partialorder %v893_v21, 8.507059e+37  ;;  %vm1178_vm5 = vcmask 1041408  }
 0x1c9   : > { %1142 = vmatpush.msrb.mxu2 %v882_v9  ;;  %v892_v26 = vsel %vm891_vm3, %v2232_v27, %v888_v44  ;;  %vm1183_vm9 = vcmp.lt.s32.totalorder %v1181_v10, 512 }
 0x1ca   : > { %1344 = vmatmul.msk.f32.vlgmr.msrb.gmra.mxu2 %vm650_vm12, %v2172_v34  ;;  %v897_v50 = vsel %vm894_vm2, %v896_v54, %v892_v26 }
 0x1cb   : > { %1162 = vmatpush.msrb.mxu3 %v897_v50 }
 0x1cc   : > { %1345 = vmatmul.msk.f32.vlgmr.msrb.gmra.mxu3 %vm650_vm12, %v2172_v34  ;;  %vm1176_vm12 = vcmask 1042434  }
 0x232   : > { %v1104_v27 = vpop.f32.mrf.mxu0 }
 0x233   : > { %v1105_v34 = vadd.f32 %v1104_v27, %v1083_v8 }
 0x238   : > { %v1124_v51 = vpop.f32.mrf.mxu1 }
 0x239   : > { %v1125_v25 = vadd.f32 %v1124_v51, %v1083_v8 }
 0x23b   : > { %v1171_v14 = vrot.slane %v1125_v25, 7 }
 0x23d   : > { %v1175_v0 = vsel %vm1174_vm8, %v1105_v34, %v1171_v14 }
 0x24d   : > { %v1144_v45 = vpop.f32.mrf.mxu2 }
 0x24e   : > { %v1145_v49 = vadd.f32 %v1144_v45, %v1083_v8 }
 0x24f   : > { %v1164_v20 = vpop.f32.mrf.mxu3 }
 0x250   : > { %v1172_v60 = vrot.slane %v1145_v49, 6  ;;  %v1165_v55 = vadd.f32 %v1164_v20, %v1083_v8 }
 0x252   : > { %v1173_v23 = vrot.slane %v1165_v55, 5 }
 0x254   : > { %v1177_v19 = vsel %vm1176_vm12, %v1172_v60, %v1173_v23 }
 0x255   : > { %v1179_v11 = vsel %vm1178_vm5, %v1175_v0, %v1177_v19 }
 0x256   : > { %1185 = vst.msk [vmem:[%s178_s14] sm:$0xf] %vm1183_vm9, %v1179_v11 }
 0x257   : > { %1640 = shalt.err (!%p1637_p9)
}
 0x258   : > { %1357 = dma.vmem_to_hbm [thread:$0]  (%p1767_p13), %s1200_s15, 64, %s1202_s18, %s1187_s16  }
 0x259 PF: > { %s1213_s29 = sand.u32 1, %s1671_s9   ;;  %p2625_p10 = scmp.ge.s32.totalorder %s1683_s12, 2 }
 0x25a   : > { %s1214_s4 = scalar_lea.sflag [#allocation4], %s1213_s29 }
 0x25b   : > { %p1368_p11 = pnand %p2625_p10, %p1772_p4 }
 0x25d   : > { %p1369_p0 = pneg %p1368_p11 }
 0x25f   : > { %1666 = dma.done.wait (%p1369_p0), %s1214_s4, 64  }
 0x260   : > { %1668 = vsyncadd (%p1369_p0), %s1214_s4, 4294967232  ;;  %p16_p2 = scmp.ge.s32.totalorder %s1747_s23, 4   ;;  %s2626_s9 = smov %s1675_s10 }
 0x261   : > { %s2627_s10 = smov %s1679_s11  ;;  %s2628_s11 = smov %s1759_s26 }
 0x262   : > { %s2629_s12 = smov %s1747_s23  ;;  %18 = sbr.rel (!%p16_p2) target bundleno = 6 (0x6), region = 78 }
 0x267   :  { %1220 = vsyncpa [#allocation3], 1 }
 0x268   :  { %1222 = vsyncpa [#allocation3 + $0x1], 1 }
 0x269   :  { %1223 = vsyncpa [#allocation6], 1 }
 0x26a   :  { %1224 = vsyncpa [#allocation4], 1 }
 0x26b   :  { %1226 = vsyncpa [#allocation4 + $0x1], 1 }

</bundles_post_ra>
